<compile_context>
chip_gen: v5e
topology: v5e:2x2
jax: 0.10.0
libtpu: 0.0.40
codegen_flags: <defaults>
</compile_context>

<pallas_src>
import functools

import jax
import jax.numpy as jnp
from jax.experimental import pallas as pl
from jax.experimental.pallas import tpu as pltpu


def _round_up(x: int, m: int) -> int:
    return (x + m - 1) // m * m


def _counts_tile(counts_dtype) -> int:
    # Vocab tile sized so the (TV, 128) histogram carry stays register-resident.
    return 256 if counts_dtype == jnp.bfloat16 else 128


def logreg_kernel(mask_ref, ids_ref, mt_ref, out_ref, *, counts_dtype, unroll):
    """Grid step = (c: sequence half, i: batch tile, k: vocab tile).

    mask_ref: (split*n_bt*n_vt,) int32 SMEM  tile-occupancy (scalar prefetch)
    ids_ref : (S_half, TB) int32             ids, seq on sublanes, batch on lanes
    mt_ref  : (CP, TV) f32/bf16              folded weights W @ E^T, vocab tile k
    out_ref : (CP, TB) f32                   partial logits^T (resident across k)
    """
    c = pl.program_id(0)
    i = pl.program_id(1)
    k = pl.program_id(2)
    n_bt = pl.num_programs(1)
    n_vt = pl.num_programs(2)

    @pl.when(k == 0)
    def _init():
        out_ref[...] = jnp.zeros_like(out_ref)

    @pl.when(mask_ref[(c * n_bt + i) * n_vt + k] != 0)
    def _compute():
        S_half, TB = ids_ref.shape
        TV = mt_ref.shape[1]

        # Hoisted, lane-dense comparand: vocab ids of this tile, (TV, TB) int32.
        vocab_b = k * TV + jax.lax.broadcasted_iota(jnp.int32, (TV, TB), 0)

        def body(pos, cnt):
            tok = ids_ref[pl.ds(pos, 1), :]                   # (1, TB) sublane read
            return cnt + (tok == vocab_b).astype(cnt.dtype)   # (TV, TB)

        counts_t = jax.lax.fori_loop(
            0, S_half, body, jnp.zeros((TV, TB), counts_dtype), unroll=unroll)

        prec = (jax.lax.Precision.HIGHEST
                if mt_ref.dtype == jnp.float32 else jax.lax.Precision.DEFAULT)
        out_ref[...] += jnp.dot(mt_ref[...], counts_t.astype(mt_ref.dtype),
                                preferred_element_type=jnp.float32,
                                precision=prec)


def fold_logreg_params(embedding, fc_weight, *, compute_dtype=jnp.float32):
    """Weight-static precompute (run ONCE): MT = W @ E^T padded to (CP, V_pad)."""
    V, _D = embedding.shape
    C = fc_weight.shape[0]
    mt = jnp.dot(fc_weight.astype(jnp.float32),
                 embedding.astype(jnp.float32).T,
                 precision=jax.lax.Precision.HIGHEST)          # (C, V)
    CP = _round_up(C, 8)
    TV = min(_counts_tile(compute_dtype), _round_up(V, 128))
    V_pad = _round_up(V, TV)
    return jnp.zeros((CP, V_pad), compute_dtype).at[:C, :V].set(
        mt.astype(compute_dtype))


def logreg_pallas_apply(text, text_len, mt_p, fc_bias):
    """Per-call forward.  text: (B, S) int32 ids; mt_p from fold_logreg_params."""
    del text_len  # the PyTorch forward never uses it for compute

    B, S = text.shape
    CP, V_pad = mt_p.shape
    C = fc_bias.shape[0]

    # ---- tile sizes --------------------------------------------------------
    TB = 128                                    # always lane-dense batch tile
    B_pad = _round_up(max(B, 1), TB)
    n_bt = B_pad // TB
    # Split the sequence over a leading parallel axis when there is only one
    # batch tile so v7x's second TensorCore gets work (no effect on v5e/v6e).
    split = 2 if n_bt == 1 else 1
    S_pad = _round_up(max(S, 1), 8 * split)
    S_half = S_pad // split
    # bf16 counts are exact only while a chunk holds <= 256 positions.
    counts_dtype = (jnp.bfloat16
                    if (mt_p.dtype == jnp.bfloat16 and S_half <= 256)
                    else jnp.float32)
    TV = min(_counts_tile(counts_dtype), V_pad)
    n_vt = V_pad // TV

    # ---- ids padded/transposed: (split, S_half, B_pad), batch on lanes -----
    # Structural padding uses -1, which matches no vocab id -> contributes 0.
    ids_t = jnp.full((S_pad, B_pad), -1, jnp.int32).at[:S, :B].set(
        text.astype(jnp.int32).T)
    ids_t3 = ids_t.reshape(split, S_half, B_pad)

    # ---- scalar-prefetched occupancy mask: skip empty (c, i, k) tiles ------
    v_tile = jnp.where(ids_t3 >= 0, ids_t3 // TV, n_vt)       # n_vt = OOB -> drop
    c_idx = jax.lax.broadcasted_iota(jnp.int32, ids_t3.shape, 0)
    b_tile = jax.lax.broadcasted_iota(jnp.int32, ids_t3.shape, 2) // TB
    mask = jnp.zeros((split, n_bt, n_vt), jnp.int32).at[
        c_idx, b_tile, v_tile].add(1, mode="drop")
    mask_flat = mask.reshape(-1)

    kernel = functools.partial(logreg_kernel, counts_dtype=counts_dtype,
                               unroll=min(int(S_half), 8))

    partials = pl.pallas_call(
        kernel,
        out_shape=jax.ShapeDtypeStruct((split, CP, B_pad), jnp.float32),
        grid_spec=pltpu.PrefetchScalarGridSpec(
            num_scalar_prefetch=1,
            grid=(split, n_bt, n_vt),
            in_specs=[
                # ids: full sequence half, resident across vocab tiles.
                pl.BlockSpec((None, S_half, TB), lambda c, i, k, m: (c, 0, i)),
                # folded weights: one vocab tile.
                pl.BlockSpec((CP, TV), lambda c, i, k, m: (0, k)),
            ],
            out_specs=pl.BlockSpec((None, CP, TB), lambda c, i, k, m: (c, 0, i)),
        ),
        compiler_params=pltpu.CompilerParams(
            dimension_semantics=("parallel", "parallel", "arbitrary")),
    )(mask_flat, ids_t3, mt_p)

    logits_t = jnp.sum(partials, axis=0)                      # (CP, B_pad)
    return logits_t[:C, :B].T + fc_bias.astype(jnp.float32)   # (B, C)


def logistic_regression_forward(text, text_len, embedding, fc_weight, fc_bias,
                                *, compute_dtype=jnp.float32):
    """Convenience wrapper mirroring the PyTorch module's forward signature."""
    mt_p = fold_logreg_params(embedding, fc_weight, compute_dtype=compute_dtype)
    return logreg_pallas_apply(text, text_len, mt_p, fc_bias)


if __name__ == "__main__":
    VOCAB_SIZE = 128
    EMBED_DIM = 32
    NUM_CLASSES = 4
    PAD_TOKEN_ID = 0
    B, S = 2, 8

    key = jax.random.PRNGKey(0)
    k_emb, k_w, k_b, k_ids = jax.random.split(key, 4)

    # Parameters (deterministic synthetic init).
    embedding = jax.random.normal(k_emb, (VOCAB_SIZE, EMBED_DIM), dtype=jnp.float32)
    embedding = embedding.at[PAD_TOKEN_ID].set(0.0)     # padding_idx=0 -> zero row
    bound = 1.0 / jnp.sqrt(EMBED_DIM)
    fc_weight = jax.random.uniform(k_w, (NUM_CLASSES, EMBED_DIM),
                                   minval=-bound, maxval=bound, dtype=jnp.float32)
    fc_bias = jax.random.uniform(k_b, (NUM_CLASSES,),
                                 minval=-bound, maxval=bound, dtype=jnp.float32)

    # Inputs: token ids with trailing padding (id 0), plus per-example lengths.
    text = jax.random.randint(k_ids, (B, S), 1, VOCAB_SIZE, dtype=jnp.int32)
    text = text.at[0, 6:].set(PAD_TOKEN_ID)
    text = text.at[1, 4:].set(PAD_TOKEN_ID)
    text_len = jnp.array([6, 4], dtype=jnp.int32)

    # Pure-JAX reference of the PyTorch forward.
    ref_feat = jnp.sum(embedding[text], axis=1)                          # (B, D)
    ref_out = jnp.dot(ref_feat, fc_weight.T,
                      precision=jax.lax.Precision.HIGHEST) + fc_bias     # (B, C)

    apply_fn = jax.jit(logreg_pallas_apply)

    # f32 path: weight fold hoisted off the per-call path; parity with fp32 module.
    mt_f32 = fold_logreg_params(embedding, fc_weight, compute_dtype=jnp.float32)
    out_f32 = jax.block_until_ready(apply_fn(text, text_len, mt_f32, fc_bias))
    assert out_f32.shape == (B, NUM_CLASSES)
    assert jnp.allclose(out_f32, ref_out, atol=1e-4, rtol=1e-4)

    # bf16 MXU-feed path (v6e/v7x throughput opt-in; counts exact in bf16).
    mt_bf16 = fold_logreg_params(embedding, fc_weight, compute_dtype=jnp.bfloat16)
    out_bf16 = jax.block_until_ready(apply_fn(text, text_len, mt_bf16, fc_bias))
    assert jnp.allclose(out_bf16, ref_out, atol=5e-2, rtol=5e-2)

    print("KERNEL_OK")
</pallas_src>

<mosaic_0001>
module attributes {stable_mosaic.version = 11 : i64} {
  func.func @logreg_kernel(%arg0: i32, %arg1: i32, %arg2: i32, %arg3: memref<2xi32, #tpu.memory_space<smem>>, %arg4: memref<1x8x128xi32, #tpu.memory_space<vmem>>, %arg5: memref<8x128xf32, #tpu.memory_space<vmem>>, %arg6: memref<1x8x128xf32, #tpu.memory_space<vmem>>) attributes {dimension_semantics = [#tpu.dimension_semantics<parallel>, #tpu.dimension_semantics<parallel>, #tpu.dimension_semantics<arbitrary>], iteration_bounds = array<i64: 2, 1, 1>, scalar_prefetch = 1 : i64, scratch_operands = 0 : i64, tpu.core_type = #tpu.core_type<tc>, window_params = [{transform_indices = @transform_0, window_bounds = array<i64: 1, 8, 128>}, {transform_indices = @transform_1, window_bounds = array<i64: 8, 128>}, {transform_indices = @transform_2, window_bounds = array<i64: 1, 8, 128>}]} {
    %c0_i32 = arith.constant 0 : i32
    %0 = arith.cmpi eq, %arg2, %c0_i32 : i32
    %1 = arith.extui %0 : i1 to i32
    %c0_i32_0 = arith.constant 0 : i32
    %2 = arith.cmpi ne, %1, %c0_i32_0 : i32
    scf.if %2 {
      %cst = arith.constant 0.000000e+00 : f32
      %12 = vector.broadcast %cst : f32 to vector<8x128xf32>
      %c0 = arith.constant 0 : index
      %c0_4 = arith.constant 0 : index
      %c0_5 = arith.constant 0 : index
      %13 = vector.load %arg6[%c0, %c0_4, %c0_5] : memref<1x8x128xf32, #tpu.memory_space<vmem>>, vector<1x8x128xf32>
      %14 = vector.shape_cast %13 : vector<1x8x128xf32> to vector<8x128xf32>
      %15 = vector.shape_cast %12 : vector<8x128xf32> to vector<1x8x128xf32>
      tpu.vector_store %arg6[%c0, %c0_4, %c0_5], %15 {strides = array<i32>} : memref<1x8x128xf32, #tpu.memory_space<vmem>>, vector<1x8x128xf32>,
    } else {
    }
    %c1_i32 = arith.constant 1 : i32
    %3 = arith.muli %arg0, %c1_i32 : i32
    %4 = arith.addi %3, %arg1 : i32
    %c1_i32_1 = arith.constant 1 : i32
    %5 = arith.muli %4, %c1_i32_1 : i32
    %6 = arith.addi %5, %arg2 : i32
    %7 = arith.index_cast %6 : i32 to index
    %8 = memref.load %arg3[%7] : memref<2xi32, #tpu.memory_space<smem>>
    %c0_i32_2 = arith.constant 0 : i32
    %9 = arith.cmpi ne, %8, %c0_i32_2 : i32
    %10 = arith.extui %9 : i1 to i32
    %c0_i32_3 = arith.constant 0 : i32
    %11 = arith.cmpi ne, %10, %c0_i32_3 : i32
    scf.if %11 {
      %c128_i32 = arith.constant 128 : i32
      %12 = arith.muli %arg2, %c128_i32 : i32
      %13 = tpu.iota {dimensions = array<i32: 0>} : vector<128x128xi32>
      %14 = vector.broadcast %12 : i32 to vector<128x128xi32>
      %15 = arith.addi %14, %13 : vector<128x128xi32>
      %cst = arith.constant 0.000000e+00 : f32
      %16 = vector.broadcast %cst : f32 to vector<128x128xf32>
      %c0_i32_4 = arith.constant 0 : i32
      %c0 = arith.constant 0 : index
      %17 = arith.index_cast %c0_i32_4 : i32 to index
      %c0_5 = arith.constant 0 : index
      %18 = vector.load %arg4[%c0, %17, %c0_5] : memref<1x8x128xi32, #tpu.memory_space<vmem>>, vector<1x1x128xi32>
      %19 = vector.shape_cast %18 : vector<1x1x128xi32> to vector<1x128xi32>
      %20 = vector.broadcast %19 : vector<1x128xi32> to vector<128x128xi32>
      %21 = arith.cmpi eq, %20, %15 : vector<128x128xi32>
      %22 = arith.extui %21 : vector<128x128xi1> to vector<128x128xi32>
      %23 = arith.sitofp %22 : vector<128x128xi32> to vector<128x128xf32>
      %24 = arith.addf %16, %23 : vector<128x128xf32>
      %c1_i32_6 = arith.constant 1 : i32
      %c0_7 = arith.constant 0 : index
      %25 = arith.index_cast %c1_i32_6 : i32 to index
      %c0_8 = arith.constant 0 : index
      %26 = vector.load %arg4[%c0_7, %25, %c0_8] : memref<1x8x128xi32, #tpu.memory_space<vmem>>, vector<1x1x128xi32>
      %27 = vector.shape_cast %26 : vector<1x1x128xi32> to vector<1x128xi32>
      %28 = vector.broadcast %27 : vector<1x128xi32> to vector<128x128xi32>
      %29 = arith.cmpi eq, %28, %15 : vector<128x128xi32>
      %30 = arith.extui %29 : vector<128x128xi1> to vector<128x128xi32>
      %31 = arith.sitofp %30 : vector<128x128xi32> to vector<128x128xf32>
      %32 = arith.addf %24, %31 : vector<128x128xf32>
      %c2_i32 = arith.constant 2 : i32
      %c0_9 = arith.constant 0 : index
      %33 = arith.index_cast %c2_i32 : i32 to index
      %c0_10 = arith.constant 0 : index
      %34 = vector.load %arg4[%c0_9, %33, %c0_10] : memref<1x8x128xi32, #tpu.memory_space<vmem>>, vector<1x1x128xi32>
      %35 = vector.shape_cast %34 : vector<1x1x128xi32> to vector<1x128xi32>
      %36 = vector.broadcast %35 : vector<1x128xi32> to vector<128x128xi32>
      %37 = arith.cmpi eq, %36, %15 : vector<128x128xi32>
      %38 = arith.extui %37 : vector<128x128xi1> to vector<128x128xi32>
      %39 = arith.sitofp %38 : vector<128x128xi32> to vector<128x128xf32>
      %40 = arith.addf %32, %39 : vector<128x128xf32>
      %c3_i32 = arith.constant 3 : i32
      %c0_11 = arith.constant 0 : index
      %41 = arith.index_cast %c3_i32 : i32 to index
      %c0_12 = arith.constant 0 : index
      %42 = vector.load %arg4[%c0_11, %41, %c0_12] : memref<1x8x128xi32, #tpu.memory_space<vmem>>, vector<1x1x128xi32>
      %43 = vector.shape_cast %42 : vector<1x1x128xi32> to vector<1x128xi32>
      %44 = vector.broadcast %43 : vector<1x128xi32> to vector<128x128xi32>
      %45 = arith.cmpi eq, %44, %15 : vector<128x128xi32>
      %46 = arith.extui %45 : vector<128x128xi1> to vector<128x128xi32>
      %47 = arith.sitofp %46 : vector<128x128xi32> to vector<128x128xf32>
      %48 = arith.addf %40, %47 : vector<128x128xf32>
      %c4_i32 = arith.constant 4 : i32
      %c0_13 = arith.constant 0 : index
      %49 = arith.index_cast %c4_i32 : i32 to index
      %c0_14 = arith.constant 0 : index
      %50 = vector.load %arg4[%c0_13, %49, %c0_14] : memref<1x8x128xi32, #tpu.memory_space<vmem>>, vector<1x1x128xi32>
      %51 = vector.shape_cast %50 : vector<1x1x128xi32> to vector<1x128xi32>
      %52 = vector.broadcast %51 : vector<1x128xi32> to vector<128x128xi32>
      %53 = arith.cmpi eq, %52, %15 : vector<128x128xi32>
      %54 = arith.extui %53 : vector<128x128xi1> to vector<128x128xi32>
      %55 = arith.sitofp %54 : vector<128x128xi32> to vector<128x128xf32>
      %56 = arith.addf %48, %55 : vector<128x128xf32>
      %c5_i32 = arith.constant 5 : i32
      %c0_15 = arith.constant 0 : index
      %57 = arith.index_cast %c5_i32 : i32 to index
      %c0_16 = arith.constant 0 : index
      %58 = vector.load %arg4[%c0_15, %57, %c0_16] : memref<1x8x128xi32, #tpu.memory_space<vmem>>, vector<1x1x128xi32>
      %59 = vector.shape_cast %58 : vector<1x1x128xi32> to vector<1x128xi32>
      %60 = vector.broadcast %59 : vector<1x128xi32> to vector<128x128xi32>
      %61 = arith.cmpi eq, %60, %15 : vector<128x128xi32>
      %62 = arith.extui %61 : vector<128x128xi1> to vector<128x128xi32>
      %63 = arith.sitofp %62 : vector<128x128xi32> to vector<128x128xf32>
      %64 = arith.addf %56, %63 : vector<128x128xf32>
      %c6_i32 = arith.constant 6 : i32
      %c0_17 = arith.constant 0 : index
      %65 = arith.index_cast %c6_i32 : i32 to index
      %c0_18 = arith.constant 0 : index
      %66 = vector.load %arg4[%c0_17, %65, %c0_18] : memref<1x8x128xi32, #tpu.memory_space<vmem>>, vector<1x1x128xi32>
      %67 = vector.shape_cast %66 : vector<1x1x128xi32> to vector<1x128xi32>
      %68 = vector.broadcast %67 : vector<1x128xi32> to vector<128x128xi32>
      %69 = arith.cmpi eq, %68, %15 : vector<128x128xi32>
      %70 = arith.extui %69 : vector<128x128xi1> to vector<128x128xi32>
      %71 = arith.sitofp %70 : vector<128x128xi32> to vector<128x128xf32>
      %72 = arith.addf %64, %71 : vector<128x128xf32>
      %c7_i32 = arith.constant 7 : i32
      %c0_19 = arith.constant 0 : index
      %73 = arith.index_cast %c7_i32 : i32 to index
      %c0_20 = arith.constant 0 : index
      %74 = vector.load %arg4[%c0_19, %73, %c0_20] : memref<1x8x128xi32, #tpu.memory_space<vmem>>, vector<1x1x128xi32>
      %75 = vector.shape_cast %74 : vector<1x1x128xi32> to vector<1x128xi32>
      %76 = vector.broadcast %75 : vector<1x128xi32> to vector<128x128xi32>
      %77 = arith.cmpi eq, %76, %15 : vector<128x128xi32>
      %78 = arith.extui %77 : vector<128x128xi1> to vector<128x128xi32>
      %79 = arith.sitofp %78 : vector<128x128xi32> to vector<128x128xf32>
      %80 = arith.addf %72, %79 : vector<128x128xf32>
      %c8_i32 = arith.constant 8 : i32
      %c0_21 = arith.constant 0 : index
      %c0_22 = arith.constant 0 : index
      %c0_23 = arith.constant 0 : index
      %81 = vector.load %arg6[%c0_21, %c0_22, %c0_23] : memref<1x8x128xf32, #tpu.memory_space<vmem>>, vector<1x8x128xf32>
      %82 = vector.shape_cast %81 : vector<1x8x128xf32> to vector<8x128xf32>
      %c0_24 = arith.constant 0 : index
      %c0_25 = arith.constant 0 : index
      %83 = vector.load %arg5[%c0_24, %c0_25] : memref<8x128xf32, #tpu.memory_space<vmem>>, vector<8x128xf32>
      %cst_26 = arith.constant dense<0.000000e+00> : vector<8x128xf32>
      %84 = tpu.matmul %83, %80, %cst_26 {dimension_numbers = #tpu.dot_dimension_numbers<[1], [0], [0], [1], [0, 0, 1, 1], [], []>, precision = #tpu.contract_precision<fp32>} : vector<8x128xf32>, vector<128x128xf32>, vector<8x128xf32> -> vector<8x128xf32>
      %85 = arith.addf %82, %84 : vector<8x128xf32>
      %c0_27 = arith.constant 0 : index
      %c0_28 = arith.constant 0 : index
      %c0_29 = arith.constant 0 : index
      %86 = vector.load %arg6[%c0_27, %c0_28, %c0_29] : memref<1x8x128xf32, #tpu.memory_space<vmem>>, vector<1x8x128xf32>
      %87 = vector.shape_cast %86 : vector<1x8x128xf32> to vector<8x128xf32>
      %88 = vector.shape_cast %85 : vector<8x128xf32> to vector<1x8x128xf32>
      tpu.vector_store %arg6[%c0_27, %c0_28, %c0_29], %88 {strides = array<i32>} : memref<1x8x128xf32, #tpu.memory_space<vmem>>, vector<1x8x128xf32>,
    } else {
    }
    return
  }
  func.func @transform_0(%arg0: i32, %arg1: i32, %arg2: i32, %arg3: memref<2xi32, #tpu.memory_space<smem>>) -> (i32, i32, i32) {
    %c0_i32 = arith.constant 0 : i32
    %c0_i32_0 = arith.constant 0 : i32
    return %arg0, %c0_i32, %arg1 : i32, i32, i32
  }
  func.func @transform_1(%arg0: i32, %arg1: i32, %arg2: i32, %arg3: memref<2xi32, #tpu.memory_space<smem>>) -> (i32, i32) {
    %c0_i32 = arith.constant 0 : i32
    %c0_i32_0 = arith.constant 0 : i32
    return %c0_i32, %arg2 : i32, i32
  }
  func.func @transform_2(%arg0: i32, %arg1: i32, %arg2: i32, %arg3: memref<2xi32, #tpu.memory_space<smem>>) -> (i32, i32, i32) {
    %c0_i32 = arith.constant 0 : i32
    %c0_i32_0 = arith.constant 0 : i32
    return %arg0, %c0_i32, %arg1 : i32, i32, i32
  }
}

</mosaic_0001>

<bundles_post_ra>
// kernel: logreg_pallas_apply.1
= control target key start
LH: loop header
LB: loop body
LE: loop exit
PB: predicated region body
PF: predicated region fallthrough
CT: control target
= control target key end

     0   :  { %s1428_s15 = smov [#allocation3]   ;;  %s2089_s0 = inlined_call_operand.vmem [shape: s32[2], index: 0, kind: input, shape index: {}]   ;;  %s2090_s1 = inlined_call_operand.vmem [shape: s32[2,8,128], index: 1, kind: input, shape index: {}]   ;;  %s2091_s2 = inlined_call_operand.vmem [shape: f32[8,128], index: 2, kind: input, shape index: {}]   ;;  %s2092_s3 = inlined_call_operand.vmem [shape: f32[2,8,128], index: 3, kind: output, shape index: {}]  }
   0x1   :  { %s9_s14 = sshll.u32 %s2089_s0, 4  ;;  %s10_s14 = int_to_ptr.vmem [resolvable:$true] %s9_s14 }
   0x2   :  { %12 = dma.vmem_to_smem %s10_s14, 16, %s1428_s15, [#allocation2] }
   0x3   :  { %1414 = dma.done.wait [#allocation2], 16 }
   0x4   :  { %1415 = vsyncadd [#allocation2], 4294967280 }
   0x5   :  { %15 = sfence }
   0x6   :  { %s1454_s16 = smov 0   ;;  %s1456_s17 = smov 0  }
   0x7   :  { %s1458_s18 = smov 0  }
   0x8 LB: > { %s40_s0 = sadd.s32 1, %s1422_s17  ;;  %p1221_p0 = scmp.ge.s32.totalorder %s1426_s18, 1  ;;  %s1426_s18 = sphi %s1458_s18, %s21_s18   ;;  %s1422_s17 = sphi %s1456_s17, %s2094_s17   ;;  %s1418_s16 = sphi %s1454_s16, %s2093_s16  }
   0x9   : > { %p42_p1 = scmp.ge.s32.totalorder %s40_s0, 2  ;;  %p155_p2 = scmp.lt.s32.totalorder %s1426_s18, 3 }
   0xb   : > { %s2096_s0 = smov (%p42_p1, %s40_s0), 0  ;;  %p156_p3 = pnand %p1221_p0, %p155_p2 }
   0xc   : > { %p185_p4 = scmp.lt.s32.totalorder (!%p156_p3), %s1418_s16, 1  ;;  %s210_s19 = sld [smem:[#allocation3 + %s1418_s16]] (!%p156_p3) }
   0xd   : > { %159 = sbr.rel (%p156_p3) target bundleno = 324 (0x144), region = 28 }
  0x12   : > { %s2098_s16 = smov (!%p185_p4, %s1418_s16), 1  ;;  %v1429_v0 = vmov 0.0   ;;  %p1224_p5 = scmp.eq.s32.totalorder %s210_s19, 0 }
  0x13   : > { %s1222_s20 = sshll.u32 %s2098_s16, 3 }
  0x14   : > { %s191_s23 = scalar_lea.vmem %s2090_s1, %s1222_s20  ;;  %s1478_s26 = scalar_lea.vmem %s2092_s3, %s1222_s20 }
  0x15   : > { %207 = vst [vmem:[%s1478_s26] sm:$0xff] %v1429_v0  ;;  %214 = sbr.rel (%p1224_p5) target bundleno = 324 (0x144), region = 36 }
  0x1a   : > { %v216_v1 = vlaneseq  ;;  %v1481_v2 = vld [vmem:[%s191_s23] ss:$0 sm:$0xff]  ;;  %v1483_v3 = vld [vmem:[%s191_s23 + $0x1] ss:$0 sm:$0xff]  ;;  %v1487_v5 = vld [vmem:[%s191_s23 + $0x2] ss:$0 sm:$0xff] }
  0x1b   : > { %v1489_v6 = vld [vmem:[%s191_s23 + $0x3] ss:$0 sm:$0xff]  ;;  %v1491_v7 = vld [vmem:[%s191_s23 + $0x4] ss:$0 sm:$0xff]  ;;  %v1494_v9 = vld [vmem:[%s191_s23 + $0x5] ss:$0 sm:$0xff] }
  0x1c   : > { %v1485_v4 = vshrl.u32 %v216_v1, 7  ;;  %v1497_v11 = vld [vmem:[%s191_s23 + $0x6] ss:$0 sm:$0xff]  ;;  %v1503_v12 = vld [vmem:[%s191_s23 + $0x7] ss:$0 sm:$0xff]  ;;  %v1430_v13 = vmov 0.0  }
  0x1e   : > { %v232_v8 = vadd.s32 120, %v1485_v4  ;;  %v231_v10 = vadd.s32 112, %v1485_v4  ;;  %v230_v36 = vadd.s32 104, %v1485_v4  ;;  %v229_v37 = vadd.s32 96, %v1485_v4 }
  0x1f   : > { %v1536_v40 = vadd.s32 88, %v1485_v4  ;;  %v1539_v41 = vadd.s32 80, %v1485_v4 }
  0x20   : > { %vm267_vm0 = vcmp.eq.s32.totalorder %v1481_v2, %v232_v8  ;;  %vm333_vm1 = vcmp.eq.s32.totalorder %v1483_v3, %v232_v8  ;;  %vm399_vm2 = vcmp.eq.s32.totalorder %v1487_v5, %v232_v8  ;;  %vm465_vm3 = vcmp.eq.s32.totalorder %v1489_v6, %v232_v8 }
  0x21   : > { %v1240_v14 = vsel %vm267_vm0, 1.0, %v1430_v13  ;;  %v1256_v15 = vsel %vm333_vm1, 1.0, %v1430_v13  ;;  %v1272_v16 = vsel %vm399_vm2, 1.0, %v1430_v13  ;;  %v1288_v17 = vsel %vm465_vm3, 1.0, %v1430_v13 }
  0x22   : > { %v381_v18 = vadd.f32 %v1256_v15, %v1240_v14  ;;  %vm531_vm4 = vcmp.eq.s32.totalorder %v1491_v7, %v232_v8  ;;  %vm597_vm5 = vcmp.eq.s32.totalorder %v1494_v9, %v232_v8  ;;  %vm663_vm6 = vcmp.eq.s32.totalorder %v1497_v11, %v232_v8 }
  0x23   : > { %v1304_v19 = vsel %vm531_vm4, 1.0, %v1430_v13  ;;  %v1320_v20 = vsel %vm597_vm5, 1.0, %v1430_v13  ;;  %v1336_v21 = vsel %vm663_vm6, 1.0, %v1430_v13  ;;  %vm729_vm7 = vcmp.eq.s32.totalorder %v1503_v12, %v232_v8 }
  0x24   : > { %v447_v22 = vadd.f32 %v1272_v16, %v381_v18  ;;  %v1352_v23 = vsel %vm729_vm7, 1.0, %v1430_v13  ;;  %vm266_vm8 = vcmp.eq.s32.totalorder %v1481_v2, %v231_v10  ;;  %vm332_vm9 = vcmp.eq.s32.totalorder %v1483_v3, %v231_v10 }
  0x25   : > { %v1239_v24 = vsel %vm266_vm8, 1.0, %v1430_v13  ;;  %v1255_v25 = vsel %vm332_vm9, 1.0, %v1430_v13  ;;  %vm398_vm10 = vcmp.eq.s32.totalorder %v1487_v5, %v231_v10  ;;  %vm464_vm11 = vcmp.eq.s32.totalorder %v1489_v6, %v231_v10 }
  0x26   : > { %v513_v26 = vadd.f32 %v1288_v17, %v447_v22  ;;  %v380_v27 = vadd.f32 %v1255_v25, %v1239_v24  ;;  %v1271_v28 = vsel %vm398_vm10, 1.0, %v1430_v13  ;;  %v1287_v29 = vsel %vm464_vm11, 1.0, %v1430_v13 }
  0x27   : > { %vm530_vm12 = vcmp.eq.s32.totalorder %v1491_v7, %v231_v10  ;;  %vm596_vm13 = vcmp.eq.s32.totalorder %v1494_v9, %v231_v10  ;;  %vm662_vm14 = vcmp.eq.s32.totalorder %v1497_v11, %v231_v10  ;;  %vm728_vm15 = vcmp.eq.s32.totalorder %v1503_v12, %v231_v10 }
  0x28   : > { %v579_v30 = vadd.f32 %v1304_v19, %v513_v26  ;;  %v446_v31 = vadd.f32 %v1271_v28, %v380_v27  ;;  %v1303_v32 = vsel %vm530_vm12, 1.0, %v1430_v13  ;;  %v1319_v33 = vsel %vm596_vm13, 1.0, %v1430_v13 }
  0x29   : > { %v1335_v34 = vsel %vm662_vm14, 1.0, %v1430_v13  ;;  %v1351_v35 = vsel %vm728_vm15, 1.0, %v1430_v13  ;;  %vm265_vm0 = vcmp.eq.s32.totalorder %v1481_v2, %v230_v36  ;;  %vm331_vm1 = vcmp.eq.s32.totalorder %v1483_v3, %v230_v36 }
  0x2a   : > { %v645_v38 = vadd.f32 %v1320_v20, %v579_v30  ;;  %v512_v39 = vadd.f32 %v1287_v29, %v446_v31  ;;  %vm397_vm2 = vcmp.eq.s32.totalorder %v1487_v5, %v230_v36  ;;  %vm463_vm3 = vcmp.eq.s32.totalorder %v1489_v6, %v230_v36 }
  0x2b   : > { %v1238_v44 = vsel %vm265_vm0, 1.0, %v1430_v13  ;;  %v1254_v45 = vsel %vm331_vm1, 1.0, %v1430_v13  ;;  %v1270_v47 = vsel %vm397_vm2, 1.0, %v1430_v13  ;;  %v1286_v48 = vsel %vm463_vm3, 1.0, %v1430_v13 }
  0x2c   : > { %v711_v42 = vadd.f32 %v1336_v21, %v645_v38  ;;  %v578_v43 = vadd.f32 %v1303_v32, %v512_v39  ;;  %v379_v46 = vadd.f32 %v1254_v45, %v1238_v44  ;;  %vm529_vm4 = vcmp.eq.s32.totalorder %v1491_v7, %v230_v36 }
  0x2d   : > { %v1302_v51 = vsel %vm529_vm4, 1.0, %v1430_v13  ;;  %vm595_vm5 = vcmp.eq.s32.totalorder %v1494_v9, %v230_v36  ;;  %vm661_vm6 = vcmp.eq.s32.totalorder %v1497_v11, %v230_v36  ;;  %vm727_vm7 = vcmp.eq.s32.totalorder %v1503_v12, %v230_v36 }
  0x2e   : > { %v777_v49 = vadd.f32 %v1352_v23, %v711_v42  ;;  %v644_v50 = vadd.f32 %v1319_v33, %v578_v43  ;;  %v445_v52 = vadd.f32 %v1270_v47, %v379_v46  ;;  %v1318_v53 = vsel %vm595_vm5, 1.0, %v1430_v13 }
  0x2f   : > { %v1334_v56 = vsel %vm661_vm6, 1.0, %v1430_v13  ;;  %v1350_v57 = vsel %vm727_vm7, 1.0, %v1430_v13  ;;  %vm264_vm8 = vcmp.eq.s32.totalorder %v1481_v2, %v229_v37  ;;  %vm330_vm9 = vcmp.eq.s32.totalorder %v1483_v3, %v229_v37 }
  0x30   : > { %v1555_v54 = vand.u32 4294901760, %v777_v49  ;;  %v710_v55 = vadd.f32 %v1335_v34, %v644_v50  ;;  %v511_v58 = vadd.f32 %v1286_v48, %v445_v52  ;;  %vm396_vm10 = vcmp.eq.s32.totalorder %v1487_v5, %v229_v37 }
  0x31   : > { %v1237_v61 = vsel %vm264_vm8, 1.0, %v1430_v13  ;;  %v1253_v62 = vsel %vm330_vm9, 1.0, %v1430_v13  ;;  %v1269_v1 = vsel %vm396_vm10, 1.0, %v1430_v13  ;;  %vm462_vm11 = vcmp.eq.s32.totalorder %v1489_v6, %v229_v37 }
  0x32   : > { %781 = vmatpush.msra.mxu0 %v1555_v54  ;;  %v776_v59 = vadd.f32 %v1351_v35, %v710_v55  ;;  %v1564_v60 = vsub.f32 %v777_v49, %v1555_v54  ;;  %977 = vmatpush.msra.mxu3 %v1555_v54  ;;  %v577_v63 = vadd.f32 %v1302_v51, %v511_v58  ;;  %v1285_v14 = vsel %vm462_vm11, 1.0, %v1430_v13 }
  0x33   : > { %v378_v0 = vadd.f32 %v1253_v62, %v1237_v61  ;;  %vm528_vm12 = vcmp.eq.s32.totalorder %v1491_v7, %v229_v37  ;;  %vm594_vm13 = vcmp.eq.s32.totalorder %v1494_v9, %v229_v37  ;;  %vm660_vm14 = vcmp.eq.s32.totalorder %v1497_v11, %v229_v37 }
  0x34   : > { %v1571_v8 = vand.u32 4294901760, %v776_v59  ;;  %v823_v10 = vand.u32 4294901760, %v1564_v60  ;;  %924 = vmatpush.msra.mxu2 %v1564_v60  ;;  %v643_v15 = vadd.f32 %v1318_v53, %v577_v63  ;;  %v1301_v17 = vsel %vm528_vm12, 1.0, %v1430_v13 }
  0x35   : > { %v444_v16 = vadd.f32 %v1269_v1, %v378_v0  ;;  %v1317_v19 = vsel %vm594_vm13, 1.0, %v1430_v13  ;;  %vm726_vm15 = vcmp.eq.s32.totalorder %v1503_v12, %v229_v37  ;;  %v1333_v22 = vsel %vm660_vm14, 1.0, %v1430_v13 }
  0x36   : > { %783 = vmatpush.msra.mxu0 %v1571_v8  ;;  %v824_v18 = vsub.f32 %v1564_v60, %v823_v10  ;;  %979 = vmatpush.msra.mxu3 %v1571_v8  ;;  %v709_v20 = vadd.f32 %v1334_v56, %v643_v15  ;;  %v1349_v23 = vsel %vm726_vm15, 1.0, %v1430_v13  ;;  %v1590_v25 = vsub.f32 %v776_v59, %v1571_v8 }
  0x37   : > { %v510_v21 = vadd.f32 %v1285_v14, %v444_v16  ;;  %vm263_vm0 = vcmp.eq.s32.totalorder %v1481_v2, %v1536_v40  ;;  %vm329_vm1 = vcmp.eq.s32.totalorder %v1483_v3, %v1536_v40  ;;  %vm395_vm2 = vcmp.eq.s32.totalorder %v1487_v5, %v1536_v40 }
  0x38   : > { %v825_v24 = vand.u32 4294901760, %v824_v18  ;;  %v775_v26 = vadd.f32 %v1350_v57, %v709_v20  ;;  %v1236_v28 = vsel %vm263_vm0, 1.0, %v1430_v13  ;;  %v1252_v29 = vsel %vm329_vm1, 1.0, %v1430_v13  ;;  %927 = vmatpush.msra.mxu2 %v1590_v25 }
  0x39   : > { %v576_v27 = vadd.f32 %v1301_v17, %v510_v21  ;;  %v829_v30 = vand.u32 4294901760, %v1590_v25  ;;  %v377_v31 = vadd.f32 %v1252_v29, %v1236_v28  ;;  %vm461_vm3 = vcmp.eq.s32.totalorder %v1489_v6, %v1536_v40 }
  0x3a   : > { %826 = vmatpush.msra.mxu1 %v825_v24  ;;  %v1604_v32 = vand.u32 4294901760, %v775_v26  ;;  %v1268_v34 = vsel %vm395_vm2, 1.0, %v1430_v13  ;;  %v1284_v35 = vsel %vm461_vm3, 1.0, %v1430_v13  ;;  %vm527_vm4 = vcmp.eq.s32.totalorder %v1491_v7, %v1536_v40 }
  0x3b   : > { %v642_v33 = vadd.f32 %v1317_v19, %v576_v27  ;;  %v830_v36 = vsub.f32 %v1590_v25, %v829_v30  ;;  %v443_v37 = vadd.f32 %v1268_v34, %v377_v31  ;;  %vm593_vm5 = vcmp.eq.s32.totalorder %v1494_v9, %v1536_v40 }
  0x3c   : > { %785 = vmatpush.msra.mxu0 %v1604_v32  ;;  %v1300_v39 = vsel %vm527_vm4, 1.0, %v1430_v13  ;;  %v1316_v42 = vsel %vm593_vm5, 1.0, %v1430_v13  ;;  %vm659_vm6 = vcmp.eq.s32.totalorder %v1497_v11, %v1536_v40  ;;  %981 = vmatpush.msra.mxu3 %v1604_v32  ;;  %vm725_vm7 = vcmp.eq.s32.totalorder %v1503_v12, %v1536_v40 }
  0x3d   : > { %v708_v38 = vadd.f32 %v1333_v22, %v642_v33  ;;  %v831_v43 = vand.u32 4294901760, %v830_v36  ;;  %v509_v44 = vadd.f32 %v1284_v35, %v443_v37  ;;  %v1332_v45 = vsel %vm659_vm6, 1.0, %v1430_v13 }
  0x3e   : > { %v1348_v47 = vsel %vm725_vm7, 1.0, %v1430_v13  ;;  %v1626_v48 = vsub.f32 %v775_v26, %v1604_v32  ;;  %vm262_vm8 = vcmp.eq.s32.totalorder %v1481_v2, %v1539_v41  ;;  %vm328_vm9 = vcmp.eq.s32.totalorder %v1483_v3, %v1539_v41 }
  0x3f   : > { %v774_v46 = vadd.f32 %v1349_v23, %v708_v38  ;;  %832 = vmatpush.msra.mxu1 %v831_v43  ;;  %v575_v49 = vadd.f32 %v1300_v39, %v509_v44  ;;  %v1235_v50 = vsel %vm262_vm8, 1.0, %v1430_v13  ;;  %vm394_vm10 = vcmp.eq.s32.totalorder %v1487_v5, %v1539_v41 }
  0x40   : > { %v835_v51 = vand.u32 4294901760, %v1626_v48  ;;  %v1251_v52 = vsel %vm328_vm9, 1.0, %v1430_v13  ;;  %v1267_v53 = vsel %vm394_vm10, 1.0, %v1430_v13  ;;  %930 = vmatpush.msra.mxu2 %v1626_v48  ;;  %vm460_vm11 = vcmp.eq.s32.totalorder %v1489_v6, %v1539_v41 }
  0x41   : > { %v1635_v40 = vand.u32 4294901760, %v774_v46  ;;  %v641_v55 = vadd.f32 %v1316_v42, %v575_v49  ;;  %v376_v56 = vadd.f32 %v1251_v52, %v1235_v50  ;;  %vm526_vm12 = vcmp.eq.s32.totalorder %v1491_v7, %v1539_v41 }
  0x42   : > { %v836_v57 = vsub.f32 %v1626_v48, %v835_v51  ;;  %v1283_v58 = vsel %vm460_vm11, 1.0, %v1430_v13  ;;  %v1299_v59 = vsel %vm526_vm12, 1.0, %v1430_v13  ;;  %vm592_vm13 = vcmp.eq.s32.totalorder %v1494_v9, %v1539_v41 }
  0x43   : > { %787 = vmatpush.msra.mxu0 %v1635_v40  ;;  %983 = vmatpush.msra.mxu3 %v1635_v40  ;;  %v707_v61 = vadd.f32 %v1332_v45, %v641_v55  ;;  %v442_v62 = vadd.f32 %v1267_v53, %v376_v56  ;;  %v1315_v63 = vsel %vm592_vm13, 1.0, %v1430_v13  ;;  %vm658_vm14 = vcmp.eq.s32.totalorder %v1497_v11, %v1539_v41 }
  0x44   : > { %v837_v0 = vand.u32 4294901760, %v836_v57  ;;  %v1331_v1 = vsel %vm658_vm14, 1.0, %v1430_v13  ;;  %vm724_vm15 = vcmp.eq.s32.totalorder %v1503_v12, %v1539_v41  ;;  %v1661_v14 = vsub.f32 %v774_v46, %v1635_v40 }
  0x45   : > { %v773_v15 = vadd.f32 %v1348_v47, %v707_v61  ;;  %v508_v16 = vadd.f32 %v1283_v58, %v442_v62  ;;  %v1347_v17 = vsel %vm724_vm15, 1.0, %v1430_v13  ;;  %v226_v18 = vadd.s32 72, %v1485_v4 }
  0x46   : > { %838 = vmatpush.msra.mxu1 %v837_v0  ;;  %v841_v19 = vand.u32 4294901760, %v1661_v14  ;;  %v1667_v20 = vadd.s32 64, %v1485_v4  ;;  %v1670_v21 = vadd.s32 56, %v1485_v4  ;;  %v1673_v41 = vadd.s32 48, %v1485_v4  ;;  %933 = vmatpush.msra.mxu2 %v1661_v14 }
  0x47   : > { %v1676_v22 = vand.u32 4294901760, %v773_v15  ;;  %v574_v23 = vadd.f32 %v1299_v59, %v508_v16  ;;  %vm261_vm0 = vcmp.eq.s32.totalorder %v1481_v2, %v226_v18  ;;  %vm327_vm1 = vcmp.eq.s32.totalorder %v1483_v3, %v226_v18 }
  0x48   : > { %v842_v24 = vsub.f32 %v1661_v14, %v841_v19  ;;  %v1234_v26 = vsel %vm261_vm0, 1.0, %v1430_v13  ;;  %v1250_v27 = vsel %vm327_vm1, 1.0, %v1430_v13  ;;  %vm393_vm2 = vcmp.eq.s32.totalorder %v1487_v5, %v226_v18 }
  0x49   : > { %789 = vmatpush.msra.mxu0 %v1676_v22  ;;  %v640_v28 = vadd.f32 %v1315_v63, %v574_v23  ;;  %v375_v29 = vadd.f32 %v1250_v27, %v1234_v26  ;;  %v1266_v31 = vsel %vm393_vm2, 1.0, %v1430_v13  ;;  %vm459_vm3 = vcmp.eq.s32.totalorder %v1489_v6, %v226_v18  ;;  %985 = vmatpush.msra.mxu3 %v1676_v22 }
  0x4a   : > { %v843_v33 = vand.u32 4294901760, %v842_v24  ;;  %v1282_v34 = vsel %vm459_vm3, 1.0, %v1430_v13  ;;  %vm525_vm4 = vcmp.eq.s32.totalorder %v1491_v7, %v226_v18  ;;  %vm591_vm5 = vcmp.eq.s32.totalorder %v1494_v9, %v226_v18 }
  0x4b   : > { %v706_v35 = vadd.f32 %v1331_v1, %v640_v28  ;;  %v441_v36 = vadd.f32 %v1266_v31, %v375_v29  ;;  %v1298_v37 = vsel %vm525_vm4, 1.0, %v1430_v13  ;;  %v1314_v38 = vsel %vm591_vm5, 1.0, %v1430_v13 }
  0x4c   : > { %844 = vmatpush.msra.mxu1 %v843_v33  ;;  %vm657_vm6 = vcmp.eq.s32.totalorder %v1497_v11, %v226_v18  ;;  %vm723_vm7 = vcmp.eq.s32.totalorder %v1503_v12, %v226_v18  ;;  %v1698_v39 = vsub.f32 %v773_v15, %v1676_v22  ;;  %vm260_vm8 = vcmp.eq.s32.totalorder %v1481_v2, %v1667_v20 }
  0x4d   : > { %v772_v42 = vadd.f32 %v1347_v17, %v706_v35  ;;  %v507_v43 = vadd.f32 %v1282_v34, %v441_v36  ;;  %v1330_v44 = vsel %vm657_vm6, 1.0, %v1430_v13  ;;  %v1346_v45 = vsel %vm723_vm7, 1.0, %v1430_v13 }
  0x4e   : > { %v847_v46 = vand.u32 4294901760, %v1698_v39  ;;  %v1233_v47 = vsel %vm260_vm8, 1.0, %v1430_v13  ;;  %vm326_vm9 = vcmp.eq.s32.totalorder %v1483_v3, %v1667_v20  ;;  %vm392_vm10 = vcmp.eq.s32.totalorder %v1487_v5, %v1667_v20  ;;  %936 = vmatpush.msra.mxu2 %v1698_v39 }
  0x4f   : > { %v1711_v49 = vand.u32 4294901760, %v772_v42  ;;  %v573_v50 = vadd.f32 %v1298_v37, %v507_v43  ;;  %v1249_v52 = vsel %vm326_vm9, 1.0, %v1430_v13  ;;  %v1265_v53 = vsel %vm392_vm10, 1.0, %v1430_v13 }
  0x50   : > { %v848_v55 = vsub.f32 %v1698_v39, %v847_v46  ;;  %v374_v56 = vadd.f32 %v1249_v52, %v1233_v47  ;;  %vm458_vm11 = vcmp.eq.s32.totalorder %v1489_v6, %v1667_v20  ;;  %vm524_vm12 = vcmp.eq.s32.totalorder %v1491_v7, %v1667_v20 }
  0x51   : > { %791 = vmatpush.msra.mxu0 %v1711_v49  ;;  %v639_v57 = vadd.f32 %v1314_v38, %v573_v50  ;;  %v1281_v58 = vsel %vm458_vm11, 1.0, %v1430_v13  ;;  %v1297_v59 = vsel %vm524_vm12, 1.0, %v1430_v13  ;;  %vm590_vm13 = vcmp.eq.s32.totalorder %v1494_v9, %v1667_v20  ;;  %987 = vmatpush.msra.mxu3 %v1711_v49 }
  0x52   : > { %v849_v61 = vand.u32 4294901760, %v848_v55  ;;  %v440_v62 = vadd.f32 %v1265_v53, %v374_v56  ;;  %v1313_v63 = vsel %vm590_vm13, 1.0, %v1430_v13  ;;  %vm656_vm14 = vcmp.eq.s32.totalorder %v1497_v11, %v1667_v20 }
  0x53   : > { %v705_v0 = vadd.f32 %v1330_v44, %v639_v57  ;;  %v1329_v1 = vsel %vm656_vm14, 1.0, %v1430_v13  ;;  %vm722_vm15 = vcmp.eq.s32.totalorder %v1503_v12, %v1667_v20  ;;  %v1735_v15 = vsub.f32 %v772_v42, %v1711_v49 }
  0x54   : > { %850 = vmatpush.msra.mxu1 %v849_v61  ;;  %v506_v16 = vadd.f32 %v1281_v58, %v440_v62  ;;  %v1345_v17 = vsel %vm722_vm15, 1.0, %v1430_v13  ;;  %vm259_vm0 = vcmp.eq.s32.totalorder %v1481_v2, %v1670_v21  ;;  %vm325_vm1 = vcmp.eq.s32.totalorder %v1483_v3, %v1670_v21 }
  0x55   : > { %v771_v18 = vadd.f32 %v1346_v45, %v705_v0  ;;  %v853_v23 = vand.u32 4294901760, %v1735_v15  ;;  %v1232_v24 = vsel %vm259_vm0, 1.0, %v1430_v13  ;;  %v1248_v20 = vsel %vm325_vm1, 1.0, %v1430_v13  ;;  %939 = vmatpush.msra.mxu2 %v1735_v15 }
  0x56   : > { %v572_v26 = vadd.f32 %v1297_v59, %v506_v16  ;;  %v373_v27 = vadd.f32 %v1248_v20, %v1232_v24  ;;  %vm391_vm2 = vcmp.eq.s32.totalorder %v1487_v5, %v1670_v21  ;;  %vm457_vm3 = vcmp.eq.s32.totalorder %v1489_v6, %v1670_v21 }
  0x57   : > { %v1750_v28 = vand.u32 4294901760, %v771_v18  ;;  %v854_v29 = vsub.f32 %v1735_v15, %v853_v23  ;;  %v1264_v31 = vsel %vm391_vm2, 1.0, %v1430_v13  ;;  %v1280_v33 = vsel %vm457_vm3, 1.0, %v1430_v13 }
  0x58   : > { %v638_v34 = vadd.f32 %v1313_v63, %v572_v26  ;;  %v439_v35 = vadd.f32 %v1264_v31, %v373_v27  ;;  %vm523_vm4 = vcmp.eq.s32.totalorder %v1491_v7, %v1670_v21  ;;  %vm589_vm5 = vcmp.eq.s32.totalorder %v1494_v9, %v1670_v21 }
  0x59   : > { %793 = vmatpush.msra.mxu0 %v1750_v28  ;;  %v855_v36 = vand.u32 4294901760, %v854_v29  ;;  %v1296_v37 = vsel %vm523_vm4, 1.0, %v1430_v13  ;;  %v1312_v38 = vsel %vm589_vm5, 1.0, %v1430_v13  ;;  %vm655_vm6 = vcmp.eq.s32.totalorder %v1497_v11, %v1670_v21  ;;  %989 = vmatpush.msra.mxu3 %v1750_v28 }
  0x5a   : > { %v704_v42 = vadd.f32 %v1329_v1, %v638_v34  ;;  %v505_v43 = vadd.f32 %v1280_v33, %v439_v35  ;;  %v1328_v44 = vsel %vm655_vm6, 1.0, %v1430_v13  ;;  %vm721_vm7 = vcmp.eq.s32.totalorder %v1503_v12, %v1670_v21 }
  0x5b   : > { %856 = vmatpush.msra.mxu1 %v855_v36  ;;  %v1344_v45 = vsel %vm721_vm7, 1.0, %v1430_v13  ;;  %v1772_v47 = vsub.f32 %v771_v18, %v1750_v28  ;;  %vm258_vm8 = vcmp.eq.s32.totalorder %v1481_v2, %v1673_v41  ;;  %vm324_vm9 = vcmp.eq.s32.totalorder %v1483_v3, %v1673_v41 }
  0x5c   : > { %v770_v50 = vadd.f32 %v1345_v17, %v704_v42  ;;  %v571_v52 = vadd.f32 %v1296_v37, %v505_v43  ;;  %v1231_v53 = vsel %vm258_vm8, 1.0, %v1430_v13  ;;  %v1247_v55 = vsel %vm324_vm9, 1.0, %v1430_v13 }
  0x5d   : > { %v859_v21 = vand.u32 4294901760, %v1772_v47  ;;  %v372_v56 = vadd.f32 %v1247_v55, %v1231_v53  ;;  %vm390_vm10 = vcmp.eq.s32.totalorder %v1487_v5, %v1673_v41  ;;  %vm456_vm11 = vcmp.eq.s32.totalorder %v1489_v6, %v1673_v41  ;;  %942 = vmatpush.msra.mxu2 %v1772_v47 }
  0x5e   : > { %v1786_v57 = vand.u32 4294901760, %v770_v50  ;;  %v637_v58 = vadd.f32 %v1312_v38, %v571_v52  ;;  %v1263_v59 = vsel %vm390_vm10, 1.0, %v1430_v13  ;;  %v1279_v61 = vsel %vm456_vm11, 1.0, %v1430_v13 }
  0x5f   : > { %v860_v62 = vsub.f32 %v1772_v47, %v859_v21  ;;  %v438_v63 = vadd.f32 %v1263_v59, %v372_v56  ;;  %vm522_vm12 = vcmp.eq.s32.totalorder %v1491_v7, %v1673_v41  ;;  %vm588_vm13 = vcmp.eq.s32.totalorder %v1494_v9, %v1673_v41 }
  0x60   : > { %795 = vmatpush.msra.mxu0 %v1786_v57  ;;  %v703_v0 = vadd.f32 %v1328_v44, %v637_v58  ;;  %v1295_v1 = vsel %vm522_vm12, 1.0, %v1430_v13  ;;  %v1311_v16 = vsel %vm588_vm13, 1.0, %v1430_v13  ;;  %vm654_vm14 = vcmp.eq.s32.totalorder %v1497_v11, %v1673_v41  ;;  %991 = vmatpush.msra.mxu3 %v1786_v57 }
  0x61   : > { %v861_v17 = vand.u32 4294901760, %v860_v62  ;;  %v504_v18 = vadd.f32 %v1279_v61, %v438_v63  ;;  %v1327_v24 = vsel %vm654_vm14, 1.0, %v1430_v13  ;;  %vm720_vm15 = vcmp.eq.s32.totalorder %v1503_v12, %v1673_v41 }
  0x62   : > { %v769_v20 = vadd.f32 %v1344_v45, %v703_v0  ;;  %v1343_v26 = vsel %vm720_vm15, 1.0, %v1430_v13  ;;  %v1808_v27 = vsub.f32 %v770_v50, %v1786_v57  ;;  %v222_v29 = vadd.s32 40, %v1485_v4 }
  0x63   : > { %862 = vmatpush.msra.mxu1 %v861_v17  ;;  %v570_v31 = vadd.f32 %v1295_v1, %v504_v18  ;;  %v1812_v33 = vadd.s32 32, %v1485_v4  ;;  %v1815_v34 = vadd.s32 24, %v1485_v4  ;;  %v1818_v35 = vadd.s32 16, %v1485_v4 }
  0x64   : > { %v1820_v41 = vand.u32 4294901760, %v769_v20  ;;  %v865_v36 = vand.u32 4294901760, %v1808_v27  ;;  %vm257_vm0 = vcmp.eq.s32.totalorder %v1481_v2, %v222_v29  ;;  %vm323_vm1 = vcmp.eq.s32.totalorder %v1483_v3, %v222_v29  ;;  %945 = vmatpush.msra.mxu2 %v1808_v27 }
  0x65   : > { %v636_v37 = vadd.f32 %v1311_v16, %v570_v31  ;;  %v1230_v38 = vsel %vm257_vm0, 1.0, %v1430_v13  ;;  %v1246_v42 = vsel %vm323_vm1, 1.0, %v1430_v13  ;;  %vm389_vm2 = vcmp.eq.s32.totalorder %v1487_v5, %v222_v29 }
  0x66   : > { %797 = vmatpush.msra.mxu0 %v1820_v41  ;;  %v866_v43 = vsub.f32 %v1808_v27, %v865_v36  ;;  %v371_v44 = vadd.f32 %v1246_v42, %v1230_v38  ;;  %v1262_v45 = vsel %vm389_vm2, 1.0, %v1430_v13  ;;  %vm455_vm3 = vcmp.eq.s32.totalorder %v1489_v6, %v222_v29  ;;  %993 = vmatpush.msra.mxu3 %v1820_v41 }
  0x67   : > { %v702_v50 = vadd.f32 %v1327_v24, %v636_v37  ;;  %v1278_v52 = vsel %vm455_vm3, 1.0, %v1430_v13  ;;  %vm521_vm4 = vcmp.eq.s32.totalorder %v1491_v7, %v222_v29  ;;  %vm587_vm5 = vcmp.eq.s32.totalorder %v1494_v9, %v222_v29 }
  0x68   : > { %v867_v53 = vand.u32 4294901760, %v866_v43  ;;  %v437_v55 = vadd.f32 %v1262_v45, %v371_v44  ;;  %v1294_v56 = vsel %vm521_vm4, 1.0, %v1430_v13  ;;  %v1310_v58 = vsel %vm587_vm5, 1.0, %v1430_v13 }
  0x69   : > { %v768_v59 = vadd.f32 %v1343_v26, %v702_v50  ;;  %vm653_vm6 = vcmp.eq.s32.totalorder %v1497_v11, %v222_v29  ;;  %vm719_vm7 = vcmp.eq.s32.totalorder %v1503_v12, %v222_v29  ;;  %v1844_v61 = vsub.f32 %v769_v20, %v1820_v41 }
  0x6a   : > { %868 = vmatpush.msra.mxu1 %v867_v53  ;;  %v503_v62 = vadd.f32 %v1278_v52, %v437_v55  ;;  %v1326_v63 = vsel %vm653_vm6, 1.0, %v1430_v13  ;;  %v1342_v0 = vsel %vm719_vm7, 1.0, %v1430_v13  ;;  %vm256_vm8 = vcmp.eq.s32.totalorder %v1481_v2, %v1812_v33 }
  0x6b   : > { %v1850_v1 = vand.u32 4294901760, %v768_v59  ;;  %v871_v16 = vand.u32 4294901760, %v1844_v61  ;;  %v1229_v17 = vsel %vm256_vm8, 1.0, %v1430_v13  ;;  %vm322_vm9 = vcmp.eq.s32.totalorder %v1483_v3, %v1812_v33  ;;  %948 = vmatpush.msra.mxu2 %v1844_v61 }
  0x6c   : > { %v569_v18 = vadd.f32 %v1294_v56, %v503_v62  ;;  %v1245_v24 = vsel %vm322_vm9, 1.0, %v1430_v13  ;;  %vm388_vm10 = vcmp.eq.s32.totalorder %v1487_v5, %v1812_v33  ;;  %vm454_vm11 = vcmp.eq.s32.totalorder %v1489_v6, %v1812_v33 }
  0x6d   : > { %799 = vmatpush.msra.mxu0 %v1850_v1  ;;  %v872_v20 = vsub.f32 %v1844_v61, %v871_v16  ;;  %v370_v26 = vadd.f32 %v1245_v24, %v1229_v17  ;;  %v1261_v29 = vsel %vm388_vm10, 1.0, %v1430_v13  ;;  %v1277_v31 = vsel %vm454_vm11, 1.0, %v1430_v13  ;;  %995 = vmatpush.msra.mxu3 %v1850_v1 }
  0x6e   : > { %v635_v37 = vadd.f32 %v1310_v58, %v569_v18  ;;  %vm520_vm12 = vcmp.eq.s32.totalorder %v1491_v7, %v1812_v33  ;;  %vm586_vm13 = vcmp.eq.s32.totalorder %v1494_v9, %v1812_v33  ;;  %vm652_vm14 = vcmp.eq.s32.totalorder %v1497_v11, %v1812_v33 }
  0x6f   : > { %v873_v38 = vand.u32 4294901760, %v872_v20  ;;  %v436_v42 = vadd.f32 %v1261_v29, %v370_v26  ;;  %v1293_v43 = vsel %vm520_vm12, 1.0, %v1430_v13  ;;  %v1309_v44 = vsel %vm586_vm13, 1.0, %v1430_v13 }
  0x70   : > { %v701_v45 = vadd.f32 %v1326_v63, %v635_v37  ;;  %v1325_v50 = vsel %vm652_vm14, 1.0, %v1430_v13  ;;  %vm718_vm15 = vcmp.eq.s32.totalorder %v1503_v12, %v1812_v33  ;;  %v1881_v52 = vsub.f32 %v768_v59, %v1850_v1 }
  0x71   : > { %874 = vmatpush.msra.mxu1 %v873_v38  ;;  %v502_v53 = vadd.f32 %v1277_v31, %v436_v42  ;;  %v1341_v55 = vsel %vm718_vm15, 1.0, %v1430_v13  ;;  %vm255_vm0 = vcmp.eq.s32.totalorder %v1481_v2, %v1815_v34  ;;  %vm321_vm1 = vcmp.eq.s32.totalorder %v1483_v3, %v1815_v34 }
  0x72   : > { %v767_v56 = vadd.f32 %v1342_v0, %v701_v45  ;;  %v877_v58 = vand.u32 4294901760, %v1881_v52  ;;  %v1228_v62 = vsel %vm255_vm0, 1.0, %v1430_v13  ;;  %v1244_v33 = vsel %vm321_vm1, 1.0, %v1430_v13  ;;  %951 = vmatpush.msra.mxu2 %v1881_v52 }
  0x73   : > { %v568_v59 = vadd.f32 %v1293_v43, %v502_v53  ;;  %v369_v63 = vadd.f32 %v1244_v33, %v1228_v62  ;;  %vm387_vm2 = vcmp.eq.s32.totalorder %v1487_v5, %v1815_v34  ;;  %vm453_vm3 = vcmp.eq.s32.totalorder %v1489_v6, %v1815_v34 }
  0x74   : > { %v1896_v17 = vand.u32 4294901760, %v767_v56  ;;  %v878_v0 = vsub.f32 %v1881_v52, %v877_v58  ;;  %v1260_v18 = vsel %vm387_vm2, 1.0, %v1430_v13  ;;  %v1276_v24 = vsel %vm453_vm3, 1.0, %v1430_v13 }
  0x75   : > { %v634_v20 = vadd.f32 %v1309_v44, %v568_v59  ;;  %v435_v26 = vadd.f32 %v1260_v18, %v369_v63  ;;  %vm519_vm4 = vcmp.eq.s32.totalorder %v1491_v7, %v1815_v34  ;;  %vm585_vm5 = vcmp.eq.s32.totalorder %v1494_v9, %v1815_v34 }
  0x76   : > { %801 = vmatpush.msra.mxu0 %v1896_v17  ;;  %v879_v29 = vand.u32 4294901760, %v878_v0  ;;  %v1292_v31 = vsel %vm519_vm4, 1.0, %v1430_v13  ;;  %v1308_v37 = vsel %vm585_vm5, 1.0, %v1430_v13  ;;  %vm651_vm6 = vcmp.eq.s32.totalorder %v1497_v11, %v1815_v34  ;;  %997 = vmatpush.msra.mxu3 %v1896_v17 }
  0x77   : > { %v700_v38 = vadd.f32 %v1325_v50, %v634_v20  ;;  %v501_v42 = vadd.f32 %v1276_v24, %v435_v26  ;;  %v1324_v43 = vsel %vm651_vm6, 1.0, %v1430_v13  ;;  %vm717_vm7 = vcmp.eq.s32.totalorder %v1503_v12, %v1815_v34 }
  0x78   : > { %880 = vmatpush.msra.mxu1 %v879_v29  ;;  %v1340_v44 = vsel %vm717_vm7, 1.0, %v1430_v13  ;;  %v1918_v45 = vsub.f32 %v767_v56, %v1896_v17  ;;  %vm254_vm8 = vcmp.eq.s32.totalorder %v1481_v2, %v1818_v35  ;;  %vm320_vm9 = vcmp.eq.s32.totalorder %v1483_v3, %v1818_v35 }
  0x79   : > { %v766_v53 = vadd.f32 %v1341_v55, %v700_v38  ;;  %v567_v50 = vadd.f32 %v1292_v31, %v501_v42  ;;  %v1227_v62 = vsel %vm254_vm8, 1.0, %v1430_v13  ;;  %v1243_v33 = vsel %vm320_vm9, 1.0, %v1430_v13 }
  0x7a   : > { %v883_v34 = vand.u32 4294901760, %v1918_v45  ;;  %v368_v59 = vadd.f32 %v1243_v33, %v1227_v62  ;;  %vm386_vm10 = vcmp.eq.s32.totalorder %v1487_v5, %v1818_v35  ;;  %vm452_vm11 = vcmp.eq.s32.totalorder %v1489_v6, %v1818_v35  ;;  %954 = vmatpush.msra.mxu2 %v1918_v45 }
  0x7b   : > { %v1932_v56 = vand.u32 4294901760, %v766_v53  ;;  %v633_v63 = vadd.f32 %v1308_v37, %v567_v50  ;;  %v1259_v55 = vsel %vm386_vm10, 1.0, %v1430_v13  ;;  %v1275_v0 = vsel %vm452_vm11, 1.0, %v1430_v13 }
  0x7c   : > { %v884_v18 = vsub.f32 %v1918_v45, %v883_v34  ;;  %v434_v24 = vadd.f32 %v1259_v55, %v368_v59  ;;  %vm518_vm12 = vcmp.eq.s32.totalorder %v1491_v7, %v1818_v35  ;;  %vm584_vm13 = vcmp.eq.s32.totalorder %v1494_v9, %v1818_v35 }
  0x7d   : > { %803 = vmatpush.msra.mxu0 %v1932_v56  ;;  %v699_v20 = vadd.f32 %v1324_v43, %v633_v63  ;;  %v1291_v26 = vsel %vm518_vm12, 1.0, %v1430_v13  ;;  %vm650_vm14 = vcmp.eq.s32.totalorder %v1497_v11, %v1818_v35  ;;  %999 = vmatpush.msra.mxu3 %v1932_v56  ;;  %vm716_vm15 = vcmp.eq.s32.totalorder %v1503_v12, %v1818_v35 }
  0x7e   : > { %v885_v29 = vand.u32 4294901760, %v884_v18  ;;  %v500_v31 = vadd.f32 %v1275_v0, %v434_v24  ;;  %v1307_v38 = vsel %vm584_vm13, 1.0, %v1430_v13  ;;  %v1952_v42 = vsub.f32 %v766_v53, %v1932_v56 }
  0x7f   : > { %v765_v37 = vadd.f32 %v1340_v44, %v699_v20  ;;  %v218_v43 = vadd.s32 8, %v1485_v4  ;;  %v1323_v62 = vsel %vm650_vm14, 1.0, %v1430_v13  ;;  %v1339_v33 = vsel %vm716_vm15, 1.0, %v1430_v13 }
  0x80   : > { %886 = vmatpush.msra.mxu1 %v885_v29  ;;  %v566_v50 = vadd.f32 %v1291_v26, %v500_v31  ;;  %vm252_vm0 = vcmp.eq.s32.totalorder %v1481_v2, %v1485_v4  ;;  %v889_v35 = vand.u32 4294901760, %v1952_v42  ;;  %957 = vmatpush.msra.mxu2 %v1952_v42  ;;  %vm318_vm7 = vcmp.eq.s32.totalorder %v1483_v3, %v1485_v4 }
  0x81   : > { %v1959_v59 = vand.u32 4294901760, %v765_v37  ;;  %vm253_vm1 = vcmp.eq.s32.totalorder %v1481_v2, %v218_v43  ;;  %vm319_vm2 = vcmp.eq.s32.totalorder %v1483_v3, %v218_v43  ;;  %vm385_vm3 = vcmp.eq.s32.totalorder %v1487_v5, %v218_v43 }
  0x82   : > { %v632_v44 = vadd.f32 %v1307_v38, %v566_v50  ;;  %v1226_v53 = vsel %vm253_vm1, 1.0, %v1430_v13  ;;  %v1242_v63 = vsel %vm319_vm2, 1.0, %v1430_v13  ;;  %v890_v55 = vsub.f32 %v1952_v42, %v889_v35 }
  0x83   : > { %805 = vmatpush.msra.mxu0 %v1959_v59  ;;  %v367_v0 = vadd.f32 %v1242_v63, %v1226_v53  ;;  %v1258_v18 = vsel %vm385_vm3, 1.0, %v1430_v13  ;;  %vm451_vm4 = vcmp.eq.s32.totalorder %v1489_v6, %v218_v43  ;;  %1001 = vmatpush.msra.mxu3 %v1959_v59  ;;  %vm517_vm5 = vcmp.eq.s32.totalorder %v1491_v7, %v218_v43 }
  0x84   : > { %v698_v24 = vadd.f32 %v1323_v62, %v632_v44  ;;  %v1274_v20 = vsel %vm451_vm4, 1.0, %v1430_v13  ;;  %vm583_vm6 = vcmp.eq.s32.totalorder %v1494_v9, %v218_v43  ;;  %v891_v26 = vand.u32 4294901760, %v890_v55 }
  0x85   : > { %v433_v29 = vadd.f32 %v1258_v18, %v367_v0  ;;  %vm384_vm8 = vcmp.eq.s32.totalorder %v1487_v5, %v1485_v4  ;;  %v1290_v38 = vsel %vm517_vm5, 1.0, %v1430_v13  ;;  %v1306_v50 = vsel %vm583_vm6, 1.0, %v1430_v13 }
  0x86   : > { %v764_v31 = vadd.f32 %v1339_v33, %v698_v24  ;;  %v1985_v62 = vsub.f32 %v765_v37, %v1959_v59  ;;  %892 = vmatpush.msra.mxu1 %v891_v26  ;;  %vm649_vm9 = vcmp.eq.s32.totalorder %v1497_v11, %v218_v43  ;;  %vm715_vm10 = vcmp.eq.s32.totalorder %v1503_v12, %v218_v43  ;;  %v779_v24 = vld [vmem:[%s2091_s2] sm:$0xff] }
  0x87   : > { %v499_v44 = vadd.f32 %v1274_v20, %v433_v29  ;;  %v1225_v3 = vsel %vm252_vm0, 1.0, %v1430_v13  ;;  %v1241_v53 = vsel %vm318_vm7, 1.0, %v1430_v13  ;;  %v1257_v37 = vsel %vm384_vm8, 1.0, %v1430_v13 }
  0x88   : > { %v1993_v5 = vand.u32 4294901760, %v764_v31  ;;  %v895_v33 = vand.u32 4294901760, %v1985_v62  ;;  %960 = vmatpush.msra.mxu2 %v1985_v62  ;;  %v366_v55 = vadd.f32 %v1241_v53, %v1225_v3  ;;  %vm450_vm11 = vcmp.eq.s32.totalorder %v1489_v6, %v1485_v4 }
  0x89   : > { %v565_v63 = vadd.f32 %v1290_v38, %v499_v44  ;;  %vm516_vm12 = vcmp.eq.s32.totalorder %v1491_v7, %v1485_v4  ;;  %v1322_v2 = vsel %vm649_vm9, 1.0, %v1430_v13  ;;  %v1273_v18 = vsel %vm450_vm11, 1.0, %v1430_v13 }
  0x8a   : > { %807 = vmatpush.msra.mxu0 %v1993_v5  ;;  %v896_v0 = vsub.f32 %v1985_v62, %v895_v33  ;;  %1003 = vmatpush.msra.mxu3 %v1993_v5  ;;  %v432_v20 = vadd.f32 %v1257_v37, %v366_v55  ;;  %vm582_vm13 = vcmp.eq.s32.totalorder %v1494_v9, %v1485_v4  ;;  %v1338_v7 = vsel %vm715_vm10, 1.0, %v1430_v13 }
  0x8b   : > { %v631_v6 = vadd.f32 %v1306_v50, %v565_v63  ;;  %v1289_v29 = vsel %vm516_vm12, 1.0, %v1430_v13  ;;  %v2020_v38 = vsub.f32 %v764_v31, %v1993_v5  ;;  %vm648_vm14 = vcmp.eq.s32.totalorder %v1497_v11, %v1485_v4 }
  0x8c   : > { %v897_v26 = vand.u32 4294901760, %v896_v0  ;;  %v498_v3 = vadd.f32 %v1273_v18, %v432_v20  ;;  %v2024_v50 = vand.u32 4294901760, %v779_v24  ;;  %v1305_v9 = vsel %vm582_vm13, 1.0, %v1430_v13 }
  0x8d   : > { %v697_v44 = vadd.f32 %v1322_v2, %v631_v6  ;;  %v901_v53 = vand.u32 4294901760, %v2020_v38  ;;  %963 = vmatpush.msra.mxu2 %v2020_v38  ;;  %vm714_vm15 = vcmp.eq.s32.totalorder %v1503_v12, %v1485_v4  ;;  %v1321_v63 = vsel %vm648_vm14, 1.0, %v1430_v13 }
  0x8e   : > { %898 = vmatpush.msra.mxu1 %v897_v26  ;;  %v564_v37 = vadd.f32 %v1289_v29, %v498_v3  ;;  %v813_v31 = vsub.f32 %v779_v24, %v2024_v50  ;;  %v1337_v18 = vsel %vm714_vm15, 1.0, %v1430_v13 }
  0x8f   : > { %v763_v43 = vadd.f32 %v1338_v7, %v697_v44  ;;  %v902_v11 = vsub.f32 %v2020_v38, %v901_v53 }
  0x90   : > { %v630_v2 = vadd.f32 %v1305_v9, %v564_v37  ;;  %v814_v0 = vand.u32 4294901760, %v813_v31 }
  0x91   : > { %v808_v55 = vand.u32 4294901760, %v763_v43  ;;  %v903_v6 = vand.u32 4294901760, %v902_v11 }
  0x92   : > { %v696_v20 = vadd.f32 %v1321_v63, %v630_v2  ;;  %v815_v4 = vsub.f32 %v813_v31, %v814_v0 }
  0x93   : > { %809 = vmatpush.msra.mxu0 %v808_v55  ;;  %v906_v26 = vsub.f32 %v763_v43, %v808_v55  ;;  %1005 = vmatpush.msra.mxu3 %v808_v55 }
  0x94   : > { %904 = vmatpush.msra.mxu1 %v903_v6  ;;  %v762_v7 = vadd.f32 %v1337_v18, %v696_v20  ;;  %v816_v3 = vand.u32 4294901760, %v815_v4 }
  0x95   : > { %v907_v29 = vand.u32 4294901760, %v906_v26  ;;  %966 = vmatpush.msra.mxu2 %v906_v26 }
  0x96   : > { %v810_v12 = vand.u32 4294901760, %v762_v7 }
  0x97   : > { %v908_v24 = vsub.f32 %v906_v26, %v907_v29 }
  0x98   : > { %811 = vmatpush.msra.mxu0 %v810_v12  ;;  %v912_v38 = vsub.f32 %v762_v7, %v810_v12  ;;  %1007 = vmatpush.msra.mxu3 %v810_v12 }
  0x99   : > { %v909_v44 = vand.u32 4294901760, %v908_v24  ;;  %1011 = vmatmul.f32.vlgmr.msra.gmra.mxu3 %v814_v0  ;;  %817 = vmatmul.f32.vlgmr.msra.gmra.mxu0 %v816_v3 }
  0x9a   : > { %1018 = vmatpush.msrb.mxu0 %v823_v10  ;;  %v913_v13 = vand.u32 4294901760, %v912_v38  ;;  %969 = vmatpush.msra.mxu2 %v912_v38 }
  0x9b   : > { %910 = vmatpush.msra.mxu1 %v909_v44  ;;  %972 = vmatmul.f32.vlgmr.msra.gmra.mxu2 %v813_v31 }
  0x9c   : > { %1022 = vmatpush.msrb.mxu0 %v829_v30  ;;  %v914_v9 = vsub.f32 %v912_v38, %v913_v13 }
  0x9e   : > { %1026 = vmatpush.msrb.mxu0 %v835_v51  ;;  %v915_v43 = vand.u32 4294901760, %v914_v9  ;;  %v778_v51 = vld [vmem:[%s1478_s26] sm:$0xff] }
  0xa0   : > { %1030 = vmatpush.msrb.mxu0 %v841_v19  ;;  %916 = vmatpush.msra.mxu1 %v915_v43 }
  0xa1   : > { %918 = vmatmul.f32.vlgmr.msra.gmra.mxu1 %v2024_v50 }
  0xa2   : > { %1085 = vmatpush.msrb.mxu1 %v1555_v54  ;;  %1034 = vmatpush.msrb.mxu0 %v847_v46 }
  0xa4   : > { %1087 = vmatpush.msrb.mxu1 %v1571_v8  ;;  %1038 = vmatpush.msrb.mxu0 %v853_v23 }
  0xa6   : > { %1089 = vmatpush.msrb.mxu1 %v1604_v32  ;;  %1042 = vmatpush.msrb.mxu0 %v859_v21 }
  0xa8   : > { %1091 = vmatpush.msrb.mxu1 %v1635_v40  ;;  %1046 = vmatpush.msrb.mxu0 %v865_v36 }
  0xaa   : > { %1093 = vmatpush.msrb.mxu1 %v1676_v22  ;;  %1050 = vmatpush.msrb.mxu0 %v871_v16 }
  0xac   : > { %1095 = vmatpush.msrb.mxu1 %v1711_v49  ;;  %1054 = vmatpush.msrb.mxu0 %v877_v58 }
  0xae   : > { %1097 = vmatpush.msrb.mxu1 %v1750_v28  ;;  %1058 = vmatpush.msrb.mxu0 %v883_v34 }
  0xb0   : > { %1099 = vmatpush.msrb.mxu1 %v1786_v57  ;;  %1062 = vmatpush.msrb.mxu0 %v889_v35 }
  0xb2   : > { %1101 = vmatpush.msrb.mxu1 %v1820_v41  ;;  %1066 = vmatpush.msrb.mxu0 %v895_v33 }
  0xb4   : > { %1103 = vmatpush.msrb.mxu1 %v1850_v1  ;;  %1070 = vmatpush.msrb.mxu0 %v901_v53 }
  0xb6   : > { %1105 = vmatpush.msrb.mxu1 %v1896_v17  ;;  %1074 = vmatpush.msrb.mxu0 %v907_v29 }
  0xb8   : > { %1107 = vmatpush.msrb.mxu1 %v1932_v56  ;;  %1078 = vmatpush.msrb.mxu0 %v913_v13 }
  0xb9   : > { %1080 = vmatmul.f32.vlgmr.msrb.gmra.mxu0 %v2024_v50 }
  0xba   : > { %1109 = vmatpush.msrb.mxu1 %v1959_v59 }
  0xbc   : > { %1111 = vmatpush.msrb.mxu1 %v1993_v5 }
  0xbe   : > { %1113 = vmatpush.msrb.mxu1 %v808_v55 }
  0xc0   : > { %1115 = vmatpush.msrb.mxu1 %v810_v12 }
  0xc1   : > { %1117 = vmatmul.f32.vlgmr.msrb.gmra.mxu1 %v2024_v50 }
 0x116   : > { %v818_v60 = vpop.f32.mrf.mxu0 }
 0x11c   : > { %v1012_v30 = vpop.f32.mrf.mxu3 }
 0x11e   : > { %v919_v54 = vpop.f32.mrf.mxu1  ;;  %v973_v10 = vpop.f32.mrf.mxu2 }
 0x11f   : > { %v920_v8 = vadd.f32 %v919_v54, %v818_v60 }
 0x121   : > { %v974_v25 = vadd.f32 %v973_v10, %v920_v8 }
 0x123   : > { %v1013_v32 = vadd.f32 %v1012_v30, %v974_v25 }
 0x136   : > { %v1081_v48 = vpop.f32.mrf.mxu0 }
 0x137   : > { %v1082_v40 = vadd.f32 %v1081_v48, %v1013_v32 }
 0x13e   : > { %v1118_v14 = vpop.f32.mrf.mxu1 }
 0x13f   : > { %v1119_v19 = vadd.f32 %v1118_v14, %v1082_v40 }
 0x141   : > { %v1121_v22 = vadd.f32 %v1119_v19, %v778_v51 }
 0x143   : > { %1122 = vst [vmem:[%s1478_s26] sm:$0xff] %v1121_v22 }
 0x144 PF: > { %s21_s18 = sadd.s32 1, %s1426_s18   ;;  %s2093_s16 = smov %s1422_s17 }
 0x145   : > { %p18_p6 = scmp.ge.s32.totalorder %s21_s18, 4   ;;  %s2094_s17 = smov %s2096_s0 }
 0x147   :  { %20 = sbr.rel (!%p18_p6) target bundleno = 8 (0x8), region = 69 }

</bundles_post_ra>
